<compile_context>
chip_gen: v7x
topology: tpu7x:2x2x1
jax: 0.10.0
libtpu: 0.0.40
codegen_flags: <defaults>
</compile_context>

<pallas_src>
import jax
import jax.numpy as jnp
from jax.experimental import pallas as pl
from jax.experimental.pallas import tpu as pltpu


def cross_entropy_loss(logits, targets, *, tile_n=None):
    """logits: (N, C) float array, targets: (N,) int array of class indices.

    Returns a scalar float32 loss identical in semantics to
    torch.nn.CrossEntropyLoss() with default reduction='mean'.
    """
    n, c = logits.shape
    itemsize = jnp.dtype(logits.dtype).itemsize
    # native sublane granularity per dtype width (f32: 8, bf16: 16, int8/fp8: 32)
    sublane = {4: 8, 2: 16, 1: 32}.get(itemsize, 8)
    padded_c = ((c + 127) // 128) * 128   # lane padding of the VMEM block

    # --- VMEM working-set model (bytes per batch row) ------------------------
    #   2x  double-buffered logits block (storage dtype, lane-padded)
    # + 4x  f32 in-kernel temporaries (upcast / shifted / exp / one-hot select)
    # + 2x  double-buffered (tile_n, 1) int32 targets block (padded to 128 lanes)
    bytes_per_row = 2 * padded_c * itemsize + 4 * padded_c * 4 + 2 * 128 * 4

    vmem_tile_budget = 24 * 1024 * 1024          # target working set
    vmem_limit = 48 * 1024 * 1024                # <= v7x physical 64 MiB w/ headroom

    if sublane * bytes_per_row > 40 * 1024 * 1024:
        # TODO(synk): implement class-axis grid split + online logsumexp for
        # vocab-sized C instead of failing.
        raise NotImplementedError(
            f"num_classes={c} too large for a single-axis batch tiling "
            f"within the VMEM budget")

    # --- pick a batch tile ----------------------------------------------------
    if tile_n is None:
        tile_n = vmem_tile_budget // bytes_per_row
    tile_n = max(sublane, (int(tile_n) // sublane) * sublane)
    n_round = ((n + sublane - 1) // sublane) * sublane
    tile_n = min(tile_n, n_round)

    num_tiles = pl.cdiv(n, tile_n)
    n_pad = num_tiles * tile_n

    # --- pad ragged batch to a whole number of tiles --------------------------
    if n_pad != n:
        logits = jnp.pad(logits, ((0, n_pad - n), (0, 0)))
        targets = jnp.pad(targets, ((0, n_pad - n),))
    tgt2d = targets.astype(jnp.int32).reshape(n_pad, 1)

    # --- kernel ---------------------------------------------------------------
    def kernel(logits_ref, tgt_ref, out_ref):
        x = logits_ref[...].astype(jnp.float32)        # (tile_n, c) f32
        t = tgt_ref[...]                               # (tile_n, 1) int32

        # numerically-stable logsumexp + target gather, all in shifted domain
        m = jnp.max(x, axis=-1, keepdims=True)         # (tile_n, 1)
        shifted = x - m
        sumexp = jnp.sum(jnp.exp(shifted), axis=-1, keepdims=True)

        col = jax.lax.broadcasted_iota(jnp.int32, shifted.shape, 1)
        tgt_shifted = jnp.sum(jnp.where(col == t, shifted, 0.0),
                              axis=-1, keepdims=True)  # (tile_n, 1)

        nll = jnp.log(sumexp) - tgt_shifted            # (tile_n, 1)

        if n_pad != n:  # static: only emit the mask when padding exists
            i = pl.program_id(0)
            row = i * tile_n + jax.lax.broadcasted_iota(jnp.int32, nll.shape, 0)
            nll = jnp.where(row < n, nll, 0.0)

        # per-tile partial sum (summed + normalized by the wrapper)
        out_ref[...] = jnp.full((1, 1, 1), jnp.sum(nll), dtype=jnp.float32)

    # --- launch ---------------------------------------------------------------
    partials = pl.pallas_call(
        kernel,
        out_shape=jax.ShapeDtypeStruct((num_tiles, 1, 1), jnp.float32),
        grid_spec=pltpu.PrefetchScalarGridSpec(
            num_scalar_prefetch=0,
            grid=(num_tiles,),
            in_specs=[
                # TODO(synk): sweep pipeline_mode=pl.Buffered(3) once tile size
                # is large; default double-buffering kept for VMEM headroom.
                pl.BlockSpec((tile_n, c), lambda i: (i, 0)),
                pl.BlockSpec((tile_n, 1), lambda i: (i, 0)),
            ],
            out_specs=pl.BlockSpec((1, 1, 1), lambda i: (i, 0, 0)),
        ),
        compiler_params=pltpu.CompilerParams(
            dimension_semantics=("parallel",),   # independent tiles -> megacore OK
            vmem_limit_bytes=vmem_limit,
        ),
        cost_estimate=pl.CostEstimate(
            flops=6 * n * c,
            transcendentals=n * c + n,
            bytes_accessed=n * c * itemsize + n * 4 + num_tiles * 4,
        ),
    )(logits, tgt2d)

    return jnp.sum(partials) / n


if __name__ == "__main__":
    key = jax.random.PRNGKey(0)
    k1, k2, k3, k4 = jax.random.split(key, 4)

    # MNIST MLP head: batch=8, num_classes=10, f32 logits
    N, C = 8, 10
    logits = jax.random.normal(k1, (N, C), dtype=jnp.float32)
    targets = jax.random.randint(k2, (N,), 0, C, dtype=jnp.int32)

    loss = cross_entropy_loss(logits, targets)
    jax.block_until_ready(loss)

    ref = jnp.mean(
        jax.nn.logsumexp(logits, axis=-1)
        - jnp.take_along_axis(logits, targets[:, None], axis=-1)[:, 0]
    )
    assert jnp.allclose(loss, ref, rtol=1e-5, atol=1e-5), (loss, ref)

    # second check: bf16 logits, ragged batch (exercises multi-tile partial
    # sums + padded-row masking + in-kernel f32 upcast)
    N2, C2 = 37, 10
    logits2 = jax.random.normal(k3, (N2, C2), dtype=jnp.bfloat16)
    targets2 = jax.random.randint(k4, (N2,), 0, C2, dtype=jnp.int32)
    loss2 = cross_entropy_loss(logits2, targets2, tile_n=16)
    jax.block_until_ready(loss2)

    l2f = logits2.astype(jnp.float32)
    ref2 = jnp.mean(
        jax.nn.logsumexp(l2f, axis=-1)
        - jnp.take_along_axis(l2f, targets2[:, None], axis=-1)[:, 0]
    )
    assert jnp.allclose(loss2, ref2, rtol=1e-3, atol=1e-3), (loss2, ref2)

    # third check: auto tile sizing on a larger batch (multi-tile, no explicit
    # tile_n, no padding edge cases hidden)
    N3, C3 = 4096, 10
    k5, k6 = jax.random.split(k1)
    logits3 = jax.random.normal(k5, (N3, C3), dtype=jnp.float32)
    targets3 = jax.random.randint(k6, (N3,), 0, C3, dtype=jnp.int32)
    loss3 = cross_entropy_loss(logits3, targets3)
    jax.block_until_ready(loss3)
    ref3 = jnp.mean(
        jax.nn.logsumexp(logits3, axis=-1)
        - jnp.take_along_axis(logits3, targets3[:, None], axis=-1)[:, 0]
    )
    assert jnp.allclose(loss3, ref3, rtol=1e-5, atol=1e-5), (loss3, ref3)

    print("KERNEL_OK")
</pallas_src>

<mosaic_0001>
module attributes {stable_mosaic.version = 11 : i64} {
  func.func @kernel(%arg0: i32, %arg1: memref<8x10xf32, #tpu.memory_space<vmem>>, %arg2: memref<8x1xi32, #tpu.memory_space<vmem>>, %arg3: memref<1x1x1xf32, #tpu.memory_space<vmem>>) attributes {dimension_semantics = [#tpu.dimension_semantics<parallel>], iteration_bounds = array<i64: 1>, scalar_prefetch = 0 : i64, scratch_operands = 0 : i64, tpu.core_type = #tpu.core_type<tc>, window_params = [{transform_indices = @transform_0, window_bounds = array<i64: 8, 10>}, {transform_indices = @transform_1, window_bounds = array<i64: 8, 1>}, {transform_indices = @transform_2, window_bounds = array<i64: 1, 1, 1>}]} {
    %c0 = arith.constant 0 : index
    %c0_0 = arith.constant 0 : index
    %0 = vector.load %arg1[%c0, %c0_0] : memref<8x10xf32, #tpu.memory_space<vmem>>, vector<8x10xf32>
    %c0_1 = arith.constant 0 : index
    %c0_2 = arith.constant 0 : index
    %1 = vector.load %arg2[%c0_1, %c0_2] : memref<8x1xi32, #tpu.memory_space<vmem>>, vector<8x1xi32>
    %cst = arith.constant dense<0xFF800000> : vector<8xf32>
    %2 = vector.multi_reduction <maximumf>, %0, %cst [1] : vector<8x10xf32> to vector<8xf32>
    %3 = vector.shape_cast %2 : vector<8xf32> to vector<8x1xf32>
    %4 = vector.broadcast %3 : vector<8x1xf32> to vector<8x10xf32>
    %5 = arith.subf %0, %4 : vector<8x10xf32>
    %6 = math.exp %5 : vector<8x10xf32>
    %cst_3 = arith.constant dense<0.000000e+00> : vector<8xf32>
    %7 = vector.multi_reduction <add>, %6, %cst_3 [1] : vector<8x10xf32> to vector<8xf32>
    %8 = vector.shape_cast %7 : vector<8xf32> to vector<8x1xf32>
    %9 = tpu.iota {dimensions = array<i32: 1>} : vector<8x10xi32>
    %10 = vector.broadcast %1 : vector<8x1xi32> to vector<8x10xi32>
    %11 = arith.cmpi eq, %9, %10 : vector<8x10xi32>
    %cst_4 = arith.constant 0.000000e+00 : f32
    %12 = vector.broadcast %cst_4 : f32 to vector<8x10xf32>
    %13 = arith.select %11, %5, %12 : vector<8x10xi1>, vector<8x10xf32>
    %cst_5 = arith.constant dense<0.000000e+00> : vector<8xf32>
    %14 = vector.multi_reduction <add>, %13, %cst_5 [1] : vector<8x10xf32> to vector<8xf32>
    %15 = vector.shape_cast %14 : vector<8xf32> to vector<8x1xf32>
    %16 = math.log %8 : vector<8x1xf32>
    %17 = arith.subf %16, %15 : vector<8x1xf32>
    %18 = vector.shape_cast %17 : vector<8x1xf32> to vector<1x8x1xf32>
    %cst_6 = arith.constant dense<0.000000e+00> : vector<1xf32>
    %19 = vector.multi_reduction <add>, %18, %cst_6 [1, 2] : vector<1x8x1xf32> to vector<1xf32>
    %20 = vector.shape_cast %19 : vector<1xf32> to vector<1x1x1xf32>
    %21 = vector.extract %20[0, 0, 0] : f32 from vector<1x1x1xf32>
    %22 = vector.broadcast %21 : f32 to vector<1x1x1xf32>
    %c0_7 = arith.constant 0 : index
    %c0_8 = arith.constant 0 : index
    %c0_9 = arith.constant 0 : index
    %23 = vector.load %arg3[%c0_7, %c0_8, %c0_9] : memref<1x1x1xf32, #tpu.memory_space<vmem>>, vector<1x1x1xf32>
    tpu.vector_store %arg3[%c0_7, %c0_8, %c0_9], %22 {strides = array<i32>} : memref<1x1x1xf32, #tpu.memory_space<vmem>>, vector<1x1x1xf32>,
    return
  }
  func.func @transform_0(%arg0: i32) -> (i32, i32) {
    %c0_i32 = arith.constant 0 : i32
    %c0_i32_0 = arith.constant 0 : i32
    return %arg0, %c0_i32 : i32, i32
  }
  func.func @transform_1(%arg0: i32) -> (i32, i32) {
    %c0_i32 = arith.constant 0 : i32
    %c0_i32_0 = arith.constant 0 : i32
    return %arg0, %c0_i32 : i32, i32
  }
  func.func @transform_2(%arg0: i32) -> (i32, i32, i32) {
    %c0_i32 = arith.constant 0 : i32
    %c0_i32_0 = arith.constant 0 : i32
    %c0_i32_1 = arith.constant 0 : i32
    return %arg0, %c0_i32, %c0_i32_0 : i32, i32, i32
  }
}

</mosaic_0001>

<bundles_post_ra>
// kernel: tpu_custom_call.1
= control target key start
LH: loop header
LB: loop body
LE: loop exit
PB: predicated region body
PF: predicated region fallthrough
CT: control target
= control target key end

     0   :  { %vm14_vm0 = vcmask 80896   ;;  %s136_s0 = inlined_call_operand.vmem [shape: f32[8,10], index: 0, kind: input, shape index: {}]   ;;  %s137_s1 = inlined_call_operand.vmem [shape: s32[8,1], index: 1, kind: input, shape index: {}]   ;;  %s138_s2 = inlined_call_operand.hbm [shape: f32[1,1,1], index: 2, kind: output, shape index: {}]  }
   0x1   :  { %v12_v0 = vld [vmem:[%s136_s0] sm:$0xff] }
   0x2   :  { %7 = vsyncpa [#allocation3], 0  ;;  %v15_v1 = vsel %vm14_vm0, %v12_v0, -inf  ;;  %v98_v2 = vmov 0   ;;  %v13_v3 = vld [vmem:[%s137_s1] sm:$0xff]  ;;  %v24_v7 = vlaneseq  ;;  %vm37_vm2 = vcmask 7168  }
   0x3   :  { %69 = vset.pattern.permute.xlu0 %v98_v2  ;;  %s99_s0 = smov [#allocation2]   ;;  %vm49_vm3 = vcmask 0  }
   0x4   :  { %16 = vmax.xlane.f32.xlu0 %v15_v1  ;;  %v25_v8 = vand.u32 127, %v24_v7  ;;  %s57_s1 = sshll.u32 %s99_s0, 4  ;;  %s58_s1 = int_to_ptr.vmem [resolvable:$true] %s57_s1 }
   0x5   :  { %s74_s14 = scalar_lea.vmem %s58_s1, 16  ;;  %s78_s15 = scalar_lea.vmem %s58_s1, 32 }
   0x6   :  { %p75_p0 = scmp.ne.s32.totalorder %s58_s1, %s74_s14  ;;  %p79_p1 = scmp.lt.s32.totalorder %s58_s1, %s58_s1 }
   0x7   :  { %p80_p2 = scmp.lt.s32.totalorder %s78_s15, %s74_s14 }
   0x9   :  { %p81_p3 = por %p80_p2, %p79_p1 }
   0xb   :  { %p82_p4 = pnand %p81_p3, %p75_p0 }
  0x1a   :  { %27 = vperm.xlu0 %69, %v13_v3  }
  0x91   :  { %v17_v4 = vpop.xlane.xlu0 %16 }
  0x92   :  { %v18_v5 = vsub.f32 %v12_v0, %v17_v4 }
  0x94   :  { %v19_v6 = vmul.f32 1.442695, %v18_v5 }
  0x96   :  { %70 = vpow2.f32 %v19_v6 }
  0x99   :  { %v28_v9 = vpop.permute.xlu0 %27 }
  0x9a   :  { %vm29_vm1 = vcmp.eq.s32.totalorder %v25_v8, %v28_v9 }
  0x9b   :  { %v30_v12 = vsel %vm29_vm1, %v18_v5, 0.0 }
  0x9c   :  { %v31_v13 = vsel %vm14_vm0, %v30_v12, 0.0 }
  0xa0   :  { %v71_v10 = vpop.eup %70 }
  0xa1   :  { %v21_v11 = vsel %vm14_vm0, %v71_v10, 0.0 }
  0xa2   :  { %22 = vadd.xlane.f32.xlu1 %v21_v11 }
  0xa6   :  { %32 = vadd.xlane.f32.xlu1 %v31_v13 }
 0x12f   :  { %v23_v14 = vpop.xlane.xlu1 %22 }
 0x130   :  { %72 = vlog2.f32 %v23_v14 }
 0x133   :  { %v33_v17 = vpop.xlane.xlu1 %32 }
 0x13a   :  { %v73_v15 = vpop.eup %72 }
 0x13b   :  { %v35_v16 = vmul.f32 0.6931472, %v73_v15 }
 0x13d   :  { %v36_v18 = vsub.f32 %v35_v16, %v33_v17 }
 0x13f   :  { %v38_v19 = vsel %vm37_vm2, %v36_v18, 0.0 }
 0x140   :  { %39 = vadd.xlane.f32.xlu1 %v38_v19 }
 0x1cd   :  { %v40_v20 = vpop.xlane.xlu1 %39 }
 0x1ce   :  { %v41_v21 = vrot.slane %v40_v20, 4 }
 0x1d0   :  { %v42_v22 = vadd.f32 %v41_v21, %v40_v20 }
 0x1d2   :  { %v43_v23 = vrot.slane %v42_v22, 2 }
 0x1d4   :  { %v44_v24 = vadd.f32 %v43_v23, %v42_v22 }
 0x1d6   :  { %v45_v25 = vrot.slane %v44_v24, 1 }
 0x1d8   :  { %v46_v26 = vadd.f32 %v45_v25, %v44_v24 }
 0x1da   :  { %65 = vpush %v46_v26 }
 0x20b   :  { %s66_s13 = spop %65 }
 0x20c   :  { %v48_v27 = vstv %s66_s13 }
 0x20d   :  { %50 = vst.msk [vmem:[#allocation2] sm:$0x1] %vm49_vm3, %v48_v27 }
 0x20e   :  { %85 = shalt.err (!%p82_p4)
}
 0x20f   :  { %s86_s18 = scalar_lea.hbm %s138_s2, 16 }
 0x210   :  { %p87_p5 = scmp.ne.s32.totalorder %s138_s2, %s86_s18  ;;  %p90_p6 = scmp.lt.u32.totalorder %s86_s18, %s138_s2 }
 0x212   :  { %p92_p7 = pnand %p90_p6, %p87_p5 }
 0x214   :  { %95 = shalt.err (!%p92_p7)
}
 0x215   :  { %60 = dma.vmem_to_hbm [thread:$0]  %s58_s1, 16, %s138_s2, [#allocation3]  }
 0x216   :  { %96 = dma.done.wait [#allocation3], 16  }
 0x217   :  { %97 = vsyncadd [#allocation3], 4294967280 }
 0x218   :  { %64 = vsyncpa [#allocation3], 1 }

</bundles_post_ra>
